<compile_context>
chip_gen: v7x
topology: tpu7x:2x2x1
jax: 0.10.0
libtpu: 0.0.40
codegen_flags: <defaults>
</compile_context>

<pallas_src>
import functools
import math

import jax
import jax.numpy as jnp
from jax import lax
from jax.experimental import pallas as pl
from jax.experimental.pallas import tpu as pltpu


# ---------------------------------------------------------------------------
# Kernel-side helpers
# ---------------------------------------------------------------------------
def _float_to_monotonic_i32(v):
    """Bitcast f32 -> int32 key whose signed-int order equals the float order."""
    b = lax.bitcast_convert_type(v, jnp.int32)
    # b >= 0: key = b.  b < 0: flip the low 31 bits (sign bit stays set), which
    # reverses the order of the negative range and keeps it below positives.
    return b ^ ((b >> 31) & jnp.int32(0x7FFFFFFF))


def _mean_kth_largest(noised, k):
    """noised: (S, TB, N) f32 -> (TB, 1) f32 mean over S of the k-th largest."""
    s, _, n = noised.shape
    idx_bits = max(1, (n - 1).bit_length())
    idx_mask = (1 << idx_bits) - 1

    # Tie-break code, built once at (1, 1, N) and broadcast by the `|`.
    # Smaller lane -> larger code, so the leftmost of exact ties wins.
    lane = lax.broadcasted_iota(jnp.int32, (1, 1, n), 2)
    code = jnp.int32(n - 1) - lane
    key = (_float_to_monotonic_i32(noised) & jnp.int32(~idx_mask)) | code

    # Knock out the k-1 largest keys.  Every row has exactly one hit per step
    # because the lane codes make all keys in a row distinct (integer compares
    # are exact; no denormal/±0 issues).  k is small and static: full unroll,
    # one XLU max-reduce per step.
    knock = jnp.int32(-2 ** 31)          # below every legit (non-NaN) key
    for _ in range(k - 1):
        m = jnp.max(key, axis=-1, keepdims=True)
        key = jnp.where(key == m, knock, key)

    # k-th largest per sample, recovered at FULL precision from the untouched
    # value slab with a single select + lane sum (exactly one hit per row).
    m = jnp.max(key, axis=-1, keepdims=True)
    hit = key == m
    kth = jnp.sum(jnp.where(hit, noised, 0.0), axis=-1, keepdims=True)  # (S,TB,1)

    # Mean over the samples.  The (TB, 1) output column is tiny next to the
    # per-block compute, so we skip a lane-dense relayout of the result.
    return jnp.sum(kth, axis=0) * jnp.float32(1.0 / s)


def _noised_kernel(x_ref, z_ref, o_ref, *, k, epsilon):
    """One batch tile: x (TB, N), z (S, TB, N) bf16 -> o (TB, 1)."""
    x = x_ref[...].astype(jnp.float32)
    z = z_ref[...].astype(jnp.float32)
    noised = x[None, :, :] + jnp.float32(epsilon) * z          # (S, TB, N)
    o_ref[...] = _mean_kth_largest(noised, k).astype(o_ref.dtype)


def _exact_kernel(x_ref, o_ref, *, k):
    """epsilon == 0 fast path: all samples identical -> compute once (S=1)."""
    noised = x_ref[...].astype(jnp.float32)[None, :, :]        # (1, TB, N)
    o_ref[...] = _mean_kth_largest(noised, k).astype(o_ref.dtype)


# ---------------------------------------------------------------------------
# Tiling / per-generation sizing
# ---------------------------------------------------------------------------
def _device_profile():
    """(temporaries budget, vmem limit, vmem cap, #TensorCores) per TPU gen."""
    try:
        dev = jax.devices()[0]
        if dev.platform == "tpu":
            kind = dev.device_kind.lower()
            if "v7" in kind:
                # 64 MiB VMEM per core, 2 TensorCores per chip.
                return 12 << 20, 48 << 20, 56 << 20, 2
            two_tc = ("v4" in kind) or ("v5p" in kind)
            # 128 MiB VMEM parts (v4/v5p/v5e/v6e): spend the headroom on TB.
            return 40 << 20, 96 << 20, 120 << 20, (2 if two_tc else 1)
    except Exception:
        pass
    # Non-TPU backend (interpret mode): sizes are irrelevant, stay small.
    return 8 << 20, 32 << 20, 64 << 20, 1


def _pick_tiling(batch, n, n_sample):
    """Choose (block_rows, padded_batch, vmem_limit_bytes)."""
    budget, vmem_limit, vmem_cap, n_cores = _device_profile()
    # Peak live (S, TB, N) slabs in the body: noised (f32), key (int32), ~2
    # transients, plus the double-buffered bf16 noise input and the f32 x tile.
    per_row = n_sample * n * (4 * 4 + 2 * 2) + 2 * n * 4
    bp = -(-max(batch, 1) // 8) * 8                    # batch rounded up to 8
    tb = max(8, min((budget // max(per_row, 1)) // 8 * 8, bp))
    if n_cores > 1 and bp >= 16:
        # Keep >= 2 blocks so both TensorCores get work (parallel batch axis).
        tb = max(8, min(tb, (bp // 2) // 8 * 8))
    if tb * per_row > vmem_limit:
        # TODO(synk): for very large n * n_sample, stream over samples / tile N
        # in-kernel instead of only raising the scoped-VMEM limit.
        vmem_limit = min(tb * per_row * 3 // 2, vmem_cap)
    nblk = -(-bp // tb)
    if n_cores > 1 and nblk > 1 and nblk % 2:
        nblk += 1                                      # even grid on 2-TC parts
    return tb, nblk * tb, vmem_limit


# ---------------------------------------------------------------------------
# Wrappers
# ---------------------------------------------------------------------------
def _noised_topk_2d(x2, k, epsilon, n_sample, key):
    """x2: (batch, N) -> (batch,) smoothed top-k along the last dim."""
    batch, n = x2.shape
    out_dtype = x2.dtype if jnp.issubdtype(x2.dtype, jnp.floating) else jnp.float32
    use_noise = (float(epsilon) != 0.0)
    s = n_sample if use_noise else 1

    tb, padded, vmem_limit = _pick_tiling(batch, n, s)
    if padded != batch:
        x2 = jnp.pad(x2, ((0, padded - batch), (0, 0)))
    nblk = padded // tb

    # TODO(synk): verify the 'parallel' batch axis actually shards across both
    # v7x TensorCores; switch to core_map / CORE_PARALLEL if it does not.
    compiler_params = pltpu.CompilerParams(
        dimension_semantics=("parallel",),
        vmem_limit_bytes=vmem_limit,
    )
    out_shape = jax.ShapeDtypeStruct((padded, 1), out_dtype)
    x_spec = pl.BlockSpec((tb, n), lambda b: (b, 0))
    out_spec = pl.BlockSpec((tb, 1), lambda b: (b, 0))

    if use_noise:
        # Exact Gaussian noise (torch.randn semantics), drawn in bf16 to halve
        # the bytes of the only large HBM stream; the kernel is compute-bound,
        # so this stream stays hidden behind the software pipeline.
        z = jax.random.normal(key, (s, padded, n), dtype=jnp.bfloat16)
        kern = functools.partial(_noised_kernel, k=int(k), epsilon=float(epsilon))
        out = pl.pallas_call(
            kern,
            out_shape=out_shape,
            grid_spec=pltpu.PrefetchScalarGridSpec(
                num_scalar_prefetch=0,
                grid=(nblk,),
                in_specs=[x_spec, pl.BlockSpec((s, tb, n), lambda b: (0, b, 0))],
                out_specs=out_spec,
            ),
            compiler_params=compiler_params,
        )(x2, z)
    else:
        kern = functools.partial(_exact_kernel, k=int(k))
        out = pl.pallas_call(
            kern,
            out_shape=out_shape,
            grid_spec=pltpu.PrefetchScalarGridSpec(
                num_scalar_prefetch=0,
                grid=(nblk,),
                in_specs=[x_spec],
                out_specs=out_spec,
            ),
            compiler_params=compiler_params,
        )(x2)
    return out[:batch, 0]


def noised_topk(x, *, k, epsilon=1.0, n_sample=5, dim=-1, key=None, seed=0):
    """Smoothed (noised) top-k of `x` along `dim`; output drops that dim."""
    x = jnp.asarray(x)
    if x.ndim == 0:
        raise ValueError("x must have at least one dimension")
    if n_sample < 1:
        raise ValueError("n_sample must be >= 1")
    d = dim if dim >= 0 else dim + x.ndim
    n = x.shape[d]
    if not 1 <= k <= n:
        raise ValueError("k must be in [1, size of `dim`]")
    if key is None:
        key = jax.random.PRNGKey(seed)

    xt = jnp.moveaxis(x, d, -1)
    lead = xt.shape[:-1]
    batch = math.prod(lead) if lead else 1
    out2 = _noised_topk_2d(xt.reshape(batch, n), k, epsilon, n_sample, key)
    return out2.reshape(lead)


# ---------------------------------------------------------------------------
# Self-test
# ---------------------------------------------------------------------------
if __name__ == "__main__":
    # NoisedTopK defaults: k=3, epsilon=1.0, n_sample=5, dim=-1.
    k, epsilon, n_sample = 3, 1.0, 5
    B, N = 16, 128                       # small (batch, num_classes) logits

    root = jax.random.PRNGKey(0)
    kx, kz = jax.random.split(root)
    x = jax.random.normal(kx, (B, N), dtype=jnp.float32)

    # Exact k-th largest along dim=-1 (what epsilon=0 must reproduce).
    ref_kth = -jnp.sort(-x, axis=-1)[:, k - 1]

    # 1) epsilon = 0 fast path: must match the true top-k (up to the
    #    documented ~2^-16 relative tie-break perturbation at N=128).
    out0 = jax.block_until_ready(
        noised_topk(x, k=k, epsilon=0.0, n_sample=n_sample))
    assert out0.shape == (B,)
    assert jnp.allclose(out0, ref_kth, atol=1e-3, rtol=1e-3), (out0, ref_kth)

    # 2) epsilon = 1: smoothed top-k with Gaussian noise.  The random stream
    #    differs from torch.randn, so check shape / finiteness and that the
    #    smoothed value stays near the noiseless top-k.
    out1 = jax.block_until_ready(
        noised_topk(x, k=k, epsilon=epsilon, n_sample=n_sample, key=kz))
    assert out1.shape == (B,)
    assert bool(jnp.all(jnp.isfinite(out1)))
    assert bool(jnp.all(jnp.abs(out1 - ref_kth) < 8.0))

    print("KERNEL_OK")
</pallas_src>

<mosaic_0001>
module attributes {stable_mosaic.version = 11 : i64} {
  func.func @_exact_kernel(%arg0: i32, %arg1: memref<16x128xf32, #tpu.memory_space<vmem>>, %arg2: memref<16x1xf32, #tpu.memory_space<vmem>>) attributes {dimension_semantics = [#tpu.dimension_semantics<parallel>], iteration_bounds = array<i64: 1>, scalar_prefetch = 0 : i64, scratch_operands = 0 : i64, tpu.core_type = #tpu.core_type<tc>, window_params = [{transform_indices = @transform_0, window_bounds = array<i64: 16, 128>}, {transform_indices = @transform_1, window_bounds = array<i64: 16, 1>}]} {
    %c0 = arith.constant 0 : index
    %c0_0 = arith.constant 0 : index
    %0 = vector.load %arg1[%c0, %c0_0] : memref<16x128xf32, #tpu.memory_space<vmem>>, vector<16x128xf32>
    %1 = vector.shape_cast %0 : vector<16x128xf32> to vector<1x16x128xf32>
    %2 = tpu.iota {dimensions = array<i32: 2>} : vector<1x1x128xi32>
    %c127_i32 = arith.constant 127 : i32
    %3 = vector.broadcast %c127_i32 : i32 to vector<1x1x128xi32>
    %4 = arith.subi %3, %2 : vector<1x1x128xi32>
    %5 = tpu.bitcast %1 : vector<1x16x128xf32> -> vector<1x16x128xi32>
    %c31_i32 = arith.constant 31 : i32
    %6 = vector.broadcast %c31_i32 : i32 to vector<1x16x128xi32>
    %7 = arith.shrsi %5, %6 : vector<1x16x128xi32>
    %c2147483647_i32 = arith.constant 2147483647 : i32
    %8 = vector.broadcast %c2147483647_i32 : i32 to vector<1x16x128xi32>
    %9 = arith.andi %7, %8 : vector<1x16x128xi32>
    %10 = arith.xori %5, %9 : vector<1x16x128xi32>
    %c-128_i32 = arith.constant -128 : i32
    %11 = vector.broadcast %c-128_i32 : i32 to vector<1x16x128xi32>
    %12 = arith.andi %10, %11 : vector<1x16x128xi32>
    %13 = vector.broadcast %4 : vector<1x1x128xi32> to vector<1x16x128xi32>
    %14 = arith.ori %12, %13 : vector<1x16x128xi32>
    %cst = arith.constant dense<-2147483648> : vector<1x16xi32>
    %15 = vector.multi_reduction <maxsi>, %14, %cst [2] : vector<1x16x128xi32> to vector<1x16xi32>
    %16 = vector.shape_cast %15 : vector<1x16xi32> to vector<1x16x1xi32>
    %17 = vector.broadcast %16 : vector<1x16x1xi32> to vector<1x16x128xi32>
    %18 = arith.cmpi eq, %14, %17 : vector<1x16x128xi32>
    %c-2147483648_i32 = arith.constant -2147483648 : i32
    %19 = vector.broadcast %c-2147483648_i32 : i32 to vector<1x16x128xi32>
    %20 = arith.select %18, %19, %14 : vector<1x16x128xi1>, vector<1x16x128xi32>
    %cst_1 = arith.constant dense<-2147483648> : vector<1x16xi32>
    %21 = vector.multi_reduction <maxsi>, %20, %cst_1 [2] : vector<1x16x128xi32> to vector<1x16xi32>
    %22 = vector.shape_cast %21 : vector<1x16xi32> to vector<1x16x1xi32>
    %23 = vector.broadcast %22 : vector<1x16x1xi32> to vector<1x16x128xi32>
    %24 = arith.cmpi eq, %20, %23 : vector<1x16x128xi32>
    %c-2147483648_i32_2 = arith.constant -2147483648 : i32
    %25 = vector.broadcast %c-2147483648_i32_2 : i32 to vector<1x16x128xi32>
    %26 = arith.select %24, %25, %20 : vector<1x16x128xi1>, vector<1x16x128xi32>
    %cst_3 = arith.constant dense<-2147483648> : vector<1x16xi32>
    %27 = vector.multi_reduction <maxsi>, %26, %cst_3 [2] : vector<1x16x128xi32> to vector<1x16xi32>
    %28 = vector.shape_cast %27 : vector<1x16xi32> to vector<1x16x1xi32>
    %29 = vector.broadcast %28 : vector<1x16x1xi32> to vector<1x16x128xi32>
    %30 = arith.cmpi eq, %26, %29 : vector<1x16x128xi32>
    %cst_4 = arith.constant 0.000000e+00 : f32
    %31 = vector.broadcast %cst_4 : f32 to vector<1x16x128xf32>
    %32 = arith.select %30, %1, %31 : vector<1x16x128xi1>, vector<1x16x128xf32>
    %cst_5 = arith.constant dense<0.000000e+00> : vector<1x16xf32>
    %33 = vector.multi_reduction <add>, %32, %cst_5 [2] : vector<1x16x128xf32> to vector<1x16xf32>
    %34 = vector.shape_cast %33 : vector<1x16xf32> to vector<1x16x1xf32>
    %cst_6 = arith.constant dense<0.000000e+00> : vector<16x1xf32>
    %35 = vector.multi_reduction <add>, %34, %cst_6 [0] : vector<1x16x1xf32> to vector<16x1xf32>
    %cst_7 = arith.constant 1.000000e+00 : f32
    %36 = vector.broadcast %cst_7 : f32 to vector<16x1xf32>
    %37 = arith.mulf %35, %36 : vector<16x1xf32>
    %c0_8 = arith.constant 0 : index
    %c0_9 = arith.constant 0 : index
    %38 = vector.load %arg2[%c0_8, %c0_9] : memref<16x1xf32, #tpu.memory_space<vmem>>, vector<16x1xf32>
    tpu.vector_store %arg2[%c0_8, %c0_9], %37 {strides = array<i32>} : memref<16x1xf32, #tpu.memory_space<vmem>>, vector<16x1xf32>,
    return
  }
  func.func @transform_0(%arg0: i32) -> (i32, i32) {
    %c0_i32 = arith.constant 0 : i32
    %c0_i32_0 = arith.constant 0 : i32
    return %arg0, %c0_i32 : i32, i32
  }
  func.func @transform_1(%arg0: i32) -> (i32, i32) {
    %c0_i32 = arith.constant 0 : i32
    %c0_i32_0 = arith.constant 0 : i32
    return %arg0, %c0_i32 : i32, i32
  }
}

</mosaic_0001>

<bundles_post_ra>
// kernel: tpu_custom_call.1
= control target key start
LH: loop header
LB: loop body
LE: loop exit
PB: predicated region body
PF: predicated region fallthrough
CT: control target
= control target key end

     0   :  { %6 = vsyncpa [#allocation3], 0  ;;  %s176_s6 = smov [#allocation2]   ;;  %s217_s0 = inlined_call_operand.hbm [shape: f32[16,128], index: 0, kind: input, shape index: {}]   ;;  %s218_s1 = inlined_call_operand.vmem [shape: f32[16,1], index: 1, kind: output, shape index: {}]  }
   0x1   :  { %s12_s7 = sshll.u32 %s176_s6, 4  ;;  %s152_s10 = scalar_lea.hbm %s217_s0, 256  ;;  %s13_s7 = int_to_ptr.vmem [resolvable:$true] %s12_s7 }
   0x2   :  { %p153_p0 = scmp.ne.s32.totalorder %s217_s0, %s152_s10  ;;  %p156_p1 = scmp.lt.u32.totalorder %s152_s10, %s217_s0 }
   0x4   :  { %p158_p2 = pnand %p156_p1, %p153_p0 }
   0x6   :  { %161 = shalt.err (!%p158_p2)
}
   0x7   :  { %s162_s15 = scalar_lea.vmem %s13_s7, 256  ;;  %p167_p4 = scmp.lt.s32.totalorder %s13_s7, %s13_s7 }
   0x8   :  { %p163_p3 = scmp.ne.s32.totalorder %s13_s7, %s162_s15  ;;  %p168_p5 = scmp.lt.s32.totalorder %s162_s15, %s162_s15 }
   0xa   :  { %p169_p6 = por %p168_p5, %p167_p4 }
   0xc   :  { %p170_p7 = pnand %p169_p6, %p163_p3 }
   0xe   :  { %173 = shalt.err (!%p170_p7)
}
   0xf   :  { %s177_s16 = smov 128   ;;  %s178_s17 = smov 8  }
  0x10   :  { %18 = dma.hbm_to_vmem [thread:$0]  %s217_s0, 256, %s13_s7, [#allocation3], %s177_s16, %s177_s16, %s178_s17  }
  0x11   :  { %174 = dma.done.wait [#allocation3], 256  }
  0x12   :  { %175 = vsyncadd [#allocation3], 4294967040  ;;  %v24_v0 = vlaneseq  ;;  %v201_v1 = vld [vmem:[#allocation2] sm:$0xff]  ;;  %v203_v2 = vld [vmem:[#allocation2 + $0x8] sm:$0xff]  ;;  %vm141_vm12 = vcmask 7168  }
  0x13   :  { %v29_v4 = vshra.s32 %v201_v1, 31  ;;  %v30_v5 = vshra.s32 %v203_v2, 31 }
  0x14   :  { %v25_v3 = vand.u32 127, %v24_v0 }
  0x15   :  { %v31_v6 = vand.u32 2147483647, %v29_v4  ;;  %v32_v7 = vand.u32 2147483647, %v30_v5 }
  0x16   :  { %v26_v8 = vsub.s32 127, %v25_v3 }
  0x17   :  { %v33_v9 = vxor.u32 %v31_v6, %v201_v1  ;;  %v34_v10 = vxor.u32 %v32_v7, %v203_v2 }
  0x19   :  { %v35_v11 = vand.u32 4294967168, %v33_v9  ;;  %v36_v12 = vand.u32 4294967168, %v34_v10 }
  0x1b   :  { %v37_v13 = vor.u32 %v35_v11, %v26_v8  ;;  %v38_v14 = vor.u32 %v36_v12, %v26_v8 }
  0x1d   :  { %v40_v15 = vshra.s32 %v37_v13, 16  ;;  %v54_v16 = vshra.s32 %v38_v14, 16  ;;  %v39_v19 = vand.u32 65535, %v37_v13  ;;  %v53_v21 = vand.u32 65535, %v38_v14 }
  0x1f   :  { %v42_v17 = vcvt.s32.f32 %v40_v15  ;;  %v56_v18 = vcvt.s32.f32 %v54_v16  ;;  %v41_v20 = vcvt.s32.f32 %v39_v19  ;;  %v55_v24 = vcvt.s32.f32 %v53_v21 }
  0x21   :  { %43 = vmax.xlane.f32.xlu0 %v42_v17 }
  0x25   :  { %57 = vmax.xlane.f32.xlu0 %v56_v18 }
  0xae   :  { %v44_v22 = vpop.xlane.xlu0 %43 }
  0xaf   :  { %vm45_vm0 = vcmp.eq.f32.partialorder %v42_v17, %v44_v22  ;;  %v50_v27 = vcvt.f32.s32 %v44_v22 }
  0xb0   :  { %v46_v23 = vsel %vm45_vm0, %v41_v20, -inf }
  0xb1   :  { %47 = vmax.xlane.f32.xlu1 %v46_v23  ;;  %v51_v29 = vshll.u32 %v50_v27, 16 }
  0xb2   :  { %v58_v25 = vpop.xlane.xlu0 %57 }
  0xb3   :  { %vm59_vm1 = vcmp.eq.f32.partialorder %v56_v18, %v58_v25  ;;  %v64_v30 = vcvt.f32.s32 %v58_v25 }
  0xb4   :  { %v60_v26 = vsel %vm59_vm1, %v55_v24, -inf }
  0xb5   :  { %61 = vmax.xlane.f32.xlu1 %v60_v26  ;;  %v65_v34 = vshll.u32 %v64_v30, 16 }
 0x13e   :  { %v48_v28 = vpop.xlane.xlu1 %47 }
 0x13f   :  { %v49_v31 = vcvt.f32.s32 %v48_v28 }
 0x141   :  { %v52_v32 = vadd.s32 %v51_v29, %v49_v31 }
 0x142   :  { %v62_v33 = vpop.xlane.xlu1 %61 }
 0x143   :  { %vm67_vm2 = vcmp.eq.s32.totalorder %v37_v13, %v52_v32  ;;  %v63_v35 = vcvt.f32.s32 %v62_v33 }
 0x144   :  { %v69_v36 = vsel %vm67_vm2, 2147483648, %v37_v13 }
 0x145   :  { %v66_v37 = vadd.s32 %v65_v34, %v63_v35  ;;  %v72_v38 = vshra.s32 %v69_v36, 16  ;;  %v71_v43 = vand.u32 65535, %v69_v36 }
 0x147   :  { %vm68_vm3 = vcmp.eq.s32.totalorder %v38_v14, %v66_v37  ;;  %v74_v39 = vcvt.s32.f32 %v72_v38  ;;  %v73_v45 = vcvt.s32.f32 %v71_v43 }
 0x148   :  { %v70_v40 = vsel %vm68_vm3, 2147483648, %v38_v14 }
 0x149   :  { %75 = vmax.xlane.f32.xlu0 %v74_v39  ;;  %v86_v41 = vshra.s32 %v70_v40, 16  ;;  %v85_v46 = vand.u32 65535, %v70_v40 }
 0x14b   :  { %v88_v42 = vcvt.s32.f32 %v86_v41  ;;  %v87_v49 = vcvt.s32.f32 %v85_v46 }
 0x14d   :  { %89 = vmax.xlane.f32.xlu1 %v88_v42 }
 0x1d6   :  { %v76_v44 = vpop.xlane.xlu0 %75 }
 0x1d7   :  { %vm77_vm4 = vcmp.eq.f32.partialorder %v74_v39, %v76_v44  ;;  %v82_v51 = vcvt.f32.s32 %v76_v44 }
 0x1d8   :  { %v78_v47 = vsel %vm77_vm4, %v73_v45, -inf }
 0x1d9   :  { %79 = vmax.xlane.f32.xlu0 %v78_v47  ;;  %v83_v53 = vshll.u32 %v82_v51, 16 }
 0x1da   :  { %v90_v48 = vpop.xlane.xlu1 %89 }
 0x1db   :  { %vm91_vm5 = vcmp.eq.f32.partialorder %v88_v42, %v90_v48  ;;  %v96_v54 = vcvt.f32.s32 %v90_v48 }
 0x1dc   :  { %v92_v50 = vsel %vm91_vm5, %v87_v49, -inf }
 0x1dd   :  { %93 = vmax.xlane.f32.xlu1 %v92_v50  ;;  %v97_v58 = vshll.u32 %v96_v54, 16 }
 0x266   :  { %v80_v52 = vpop.xlane.xlu0 %79 }
 0x267   :  { %v81_v55 = vcvt.f32.s32 %v80_v52 }
 0x269   :  { %v84_v56 = vadd.s32 %v83_v53, %v81_v55 }
 0x26a   :  { %v94_v57 = vpop.xlane.xlu1 %93 }
 0x26b   :  { %vm99_vm6 = vcmp.eq.s32.totalorder %v69_v36, %v84_v56  ;;  %v95_v59 = vcvt.f32.s32 %v94_v57 }
 0x26c   :  { %v101_v60 = vsel %vm99_vm6, 2147483648, %v69_v36 }
 0x26d   :  { %v98_v61 = vadd.s32 %v97_v58, %v95_v59  ;;  %v104_v62 = vshra.s32 %v101_v60, 16  ;;  %v103_v5 = vand.u32 65535, %v101_v60 }
 0x26f   :  { %vm100_vm7 = vcmp.eq.s32.totalorder %v70_v40, %v98_v61  ;;  %v106_v63 = vcvt.s32.f32 %v104_v62  ;;  %v105_v7 = vcvt.s32.f32 %v103_v5 }
 0x270   :  { %v102_v0 = vsel %vm100_vm7, 2147483648, %v70_v40 }
 0x271   :  { %107 = vmax.xlane.f32.xlu0 %v106_v63  ;;  %v118_v3 = vshra.s32 %v102_v0, 16  ;;  %v117_v8 = vand.u32 65535, %v102_v0 }
 0x273   :  { %v120_v4 = vcvt.s32.f32 %v118_v3  ;;  %v119_v11 = vcvt.s32.f32 %v117_v8 }
 0x275   :  { %121 = vmax.xlane.f32.xlu1 %v120_v4 }
 0x2fe   :  { %v108_v6 = vpop.xlane.xlu0 %107 }
 0x2ff   :  { %vm109_vm8 = vcmp.eq.f32.partialorder %v106_v63, %v108_v6  ;;  %v114_v13 = vcvt.f32.s32 %v108_v6 }
 0x300   :  { %v110_v9 = vsel %vm109_vm8, %v105_v7, -inf }
 0x301   :  { %111 = vmax.xlane.f32.xlu0 %v110_v9  ;;  %v115_v15 = vshll.u32 %v114_v13, 16 }
 0x302   :  { %v122_v10 = vpop.xlane.xlu1 %121 }
 0x303   :  { %vm123_vm9 = vcmp.eq.f32.partialorder %v120_v4, %v122_v10  ;;  %v128_v16 = vcvt.f32.s32 %v122_v10 }
 0x304   :  { %v124_v12 = vsel %vm123_vm9, %v119_v11, -inf }
 0x305   :  { %125 = vmax.xlane.f32.xlu1 %v124_v12  ;;  %v129_v20 = vshll.u32 %v128_v16, 16 }
 0x38e   :  { %v112_v14 = vpop.xlane.xlu0 %111 }
 0x38f   :  { %v113_v17 = vcvt.f32.s32 %v112_v14 }
 0x391   :  { %v116_v18 = vadd.s32 %v115_v15, %v113_v17 }
 0x392   :  { %v126_v19 = vpop.xlane.xlu1 %125 }
 0x393   :  { %v127_v21 = vcvt.f32.s32 %v126_v19  ;;  %vm131_vm10 = vcmp.eq.s32.totalorder %v101_v60, %v116_v18 }
 0x394   :  { %v133_v22 = vsel %vm131_vm10, %v201_v1, 0.0 }
 0x395   :  { %v130_v23 = vadd.s32 %v129_v20, %v127_v21  ;;  %135 = vadd.xlane.f32.xlu0 %v133_v22 }
 0x397   :  { %vm132_vm11 = vcmp.eq.s32.totalorder %v102_v0, %v130_v23 }
 0x398   :  { %v134_v24 = vsel %vm132_vm11, %v203_v2, 0.0 }
 0x399   :  { %137 = vadd.xlane.f32.xlu1 %v134_v24 }
 0x422   :  { %v136_v25 = vpop.xlane.xlu0 %135 }
 0x423   :  { %142 = vst.msk [vmem:[%s218_s1] sm:$0xff] %vm141_vm12, %v136_v25 }
 0x426   :  { %v138_v26 = vpop.xlane.xlu1 %137 }
 0x427   :  { %143 = vst.msk [vmem:[%s218_s1 + $0x8] sm:$0xff] %vm141_vm12, %v138_v26 }
 0x428   :  { %148 = vsyncpa [#allocation3], 1 }

</bundles_post_ra>
